<compile_context>
chip_gen: v5e
topology: v5e:2x2
jax: 0.10.0
libtpu: 0.0.40
codegen_flags: <defaults>
</compile_context>

<pallas_src>
import functools

import jax
import jax.numpy as jnp
from jax.experimental import pallas as pl
from jax.experimental.pallas import tpu as pltpu


def _round_up(x, m):
    return ((x + m - 1) // m) * m


def _largest_tile(n, cap):
    """Largest multiple-of-128 divisor of n (n itself a 128-multiple), <= cap."""
    best = 128
    c = 128
    top = min(cap, n)
    while c <= top:
        if n % c == 0:
            best = c
        c += 128
    return best


def _pooler_kernel_single(x_ref, w_ref, b_ref, o_ref):
    # Single reduction step: dot + bias + ReLU straight into the output tile.
    out = jnp.dot(x_ref[...], w_ref[...], preferred_element_type=jnp.float32)
    out = out + b_ref[...]
    o_ref[...] = jnp.maximum(out, 0.0).astype(o_ref.dtype)


def _pooler_kernel_acc(x_ref, w_ref, b_ref, o_ref, acc_ref, *, tk):
    # x_ref: [tm, Hp] VMEM-resident row panel; w_ref: [tk, tn]; b_ref: [1, tn];
    # o_ref: [tm, tn]; acc_ref: f32 [tm, tn] accumulator, resident across k.
    k = pl.program_id(2)

    @pl.when(k == 0)
    def _():
        acc_ref[...] = jnp.zeros_like(acc_ref)

    start = pl.multiple_of(k * tk, tk)
    acc_ref[...] += jnp.dot(
        x_ref[:, pl.ds(start, tk)], w_ref[...], preferred_element_type=jnp.float32
    )

    @pl.when(k == pl.num_programs(2) - 1)
    def _():
        out = acc_ref[...] + b_ref[...]
        o_ref[...] = jnp.maximum(out, 0.0).astype(o_ref.dtype)


def pooler(hidden_states, weight_t, bias):
    """hidden_states: [B, S, H]; weight_t: [H, D] (PyTorch weight.T);
    bias: [D]. Returns relu(hidden_states[:, 0, :] @ weight_t + bias): [B, D]."""
    B, S, H = hidden_states.shape
    Hw, D = weight_t.shape
    assert Hw == H
    dtype = hidden_states.dtype
    itemsize = jnp.dtype(dtype).itemsize
    w_itemsize = jnp.dtype(weight_t.dtype).itemsize

    # First-token select in the wrapper: only [B, H] ever reaches the kernel.
    # TODO(synk): optionally read token 0 straight from [B,S,H] via a squeezed
    # BlockSpec to save the tiny XLA slice dispatch.
    x0 = hidden_states[:, 0, :]

    # Sublane packing multiple per dtype (f32: 8, bf16: 16, int8/fp8: 32).
    sub = {4: 8, 2: 16, 1: 32}.get(itemsize, 8)

    Hp = _round_up(H, 128)
    Dp = _round_up(D, 128)

    # Reduction tile: largest 128-multiple divisor of Hp, up to 2048.
    tk = _largest_tile(Hp, 2048)
    # Output tile: up to 512 wide, but keep >= 2 j-tiles when D >= 256 so the
    # parallel j axis can shard the weight stream across both v7x TCs.
    tn_cap = 512
    if Dp >= 256:
        tn_cap = min(tn_cap, Dp // 2)
    tn = _largest_tile(Dp, tn_cap)

    # Batch tile: keep the i-tile count at 1 whenever possible (every extra
    # i-tile re-streams the whole weight), but cap the resident x panel at
    # ~2 MiB per buffer so v5e's scoped VMEM stays comfortable.
    panel_cap_bytes = 2 * 1024 * 1024
    tm_cap = max(sub, (panel_cap_bytes // max(1, Hp * itemsize)) // sub * sub)
    tm_cap = min(tm_cap, 512)
    tm = min(tm_cap, _round_up(B, sub))
    Bp = _round_up(B, tm)

    # Pads are skipped entirely when shapes are already lane/sublane aligned.
    if (Bp, Hp) != (B, H):
        x0 = jnp.pad(x0, ((0, Bp - B), (0, Hp - H)))
    w = weight_t
    if (Hp, Dp) != (H, D):
        w = jnp.pad(w, ((0, Hp - H), (0, Dp - D)))
    b2 = bias.reshape(1, D)
    if Dp != D:
        b2 = jnp.pad(b2, ((0, 0), (0, Dp - D)))

    num_k = Hp // tk
    n_i = Bp // tm
    n_j = Dp // tn

    if num_k == 1:
        kernel = _pooler_kernel_single
        grid = (n_i, n_j)
        in_specs = [
            pl.BlockSpec((tm, Hp), lambda i, j: (i, 0)),    # resident x panel
            pl.BlockSpec((Hp, tn), lambda i, j: (0, j)),    # weight column panel
            pl.BlockSpec((1, tn), lambda i, j: (0, j)),     # bias tile
        ]
        out_specs = pl.BlockSpec((tm, tn), lambda i, j: (i, j))
        scratch_shapes = []
        dims = ("parallel", "parallel")
        tk_eff = Hp
    else:
        kernel = functools.partial(_pooler_kernel_acc, tk=tk)
        grid = (n_i, n_j, num_k)
        in_specs = [
            pl.BlockSpec((tm, Hp), lambda i, j, k: (i, 0)),  # resident x panel
            pl.BlockSpec((tk, tn), lambda i, j, k: (k, j)),  # weight tile
            pl.BlockSpec((1, tn), lambda i, j, k: (0, j)),   # bias tile
        ]
        out_specs = pl.BlockSpec((tm, tn), lambda i, j, k: (i, j))
        scratch_shapes = [pltpu.VMEM((tm, tn), jnp.float32)]
        dims = ("parallel", "parallel", "arbitrary")
        tk_eff = tk

    # Double-buffered footprint of every operand + f32 accumulator.
    vmem_bytes = (
        2 * tm * Hp * itemsize
        + 2 * tk_eff * tn * w_itemsize
        + 2 * tn * jnp.dtype(b2.dtype).itemsize
        + 2 * tm * tn * itemsize
        + tm * tn * 4
    )
    vmem_limit = int(min(64 << 20, max(32 << 20, 2 * vmem_bytes)))

    out_padded = pl.pallas_call(
        kernel,
        out_shape=jax.ShapeDtypeStruct((Bp, Dp), dtype),
        grid_spec=pltpu.PrefetchScalarGridSpec(
            num_scalar_prefetch=0,
            grid=grid,
            in_specs=in_specs,
            out_specs=out_specs,
            scratch_shapes=scratch_shapes,
        ),
        compiler_params=pltpu.CompilerParams(
            dimension_semantics=dims,
            vmem_limit_bytes=vmem_limit,
        ),
        cost_estimate=pl.CostEstimate(
            flops=2 * Bp * Hp * Dp,
            transcendentals=0,
            bytes_accessed=(
                Bp * Hp * itemsize                    # x panel, once per i-tile
                + n_i * Hp * Dp * w_itemsize          # weight stream per i-tile
                + Bp * Dp * itemsize                  # output
                + Dp * jnp.dtype(b2.dtype).itemsize   # bias
            ),
        ),
    )(x0, w, b2)

    if (Bp, Dp) != (B, D):
        return out_padded[:B, :D]
    return out_padded


def pooler_ref(hidden_states, weight_t, bias):
    x0 = hidden_states[:, 0, :]
    return jnp.maximum(x0 @ weight_t + bias, 0.0)


if __name__ == "__main__":
    # Small config: hidden_size=32, bi_hidden_size=32, batch=2, seq=8.
    B, S, H, D = 2, 8, 32, 32

    key = jax.random.PRNGKey(0)
    k_h, k_w, k_b = jax.random.split(key, 3)

    hidden_states = jax.random.normal(k_h, (B, S, H), dtype=jnp.float32)
    # PyTorch nn.Linear weight is [D, H]; store its transpose [H, D].
    weight_pt = jax.random.normal(k_w, (D, H), dtype=jnp.float32) * 0.05
    weight_t = weight_pt.T
    bias = jax.random.normal(k_b, (D,), dtype=jnp.float32) * 0.05

    out = jax.block_until_ready(pooler(hidden_states, weight_t, bias))
    expected = pooler_ref(hidden_states, weight_t, bias)
    assert out.shape == (B, D)
    assert jnp.allclose(out, expected, atol=1e-5, rtol=1e-5)

    # Secondary check: lane-aligned dims that exercise the multi-k accumulator
    # path (Hp//tk == 2), the no-pad weight path, and the 2-way j split.
    B2, S2, H2, D2 = 4, 3, 2304, 256
    kh2, kw2, kb2 = jax.random.split(jax.random.PRNGKey(1), 3)
    hs2 = jax.random.normal(kh2, (B2, S2, H2), dtype=jnp.float32)
    wt2 = jax.random.normal(kw2, (H2, D2), dtype=jnp.float32) * 0.02
    bs2 = jax.random.normal(kb2, (D2,), dtype=jnp.float32) * 0.02
    out2 = jax.block_until_ready(pooler(hs2, wt2, bs2))
    exp2 = pooler_ref(hs2, wt2, bs2)
    assert out2.shape == (B2, D2)
    assert jnp.allclose(out2, exp2, atol=1e-2, rtol=1e-2)

    print("KERNEL_OK")
</pallas_src>

<mosaic_0001>
module attributes {stable_mosaic.version = 11 : i64} {
  func.func @_pooler_kernel_single(%arg0: i32, %arg1: i32, %arg2: memref<8x128xf32, #tpu.memory_space<vmem>>, %arg3: memref<128x128xf32, #tpu.memory_space<vmem>>, %arg4: memref<1x128xf32, #tpu.memory_space<vmem>>, %arg5: memref<8x128xf32, #tpu.memory_space<vmem>>) attributes {dimension_semantics = [#tpu.dimension_semantics<parallel>, #tpu.dimension_semantics<parallel>], iteration_bounds = array<i64: 1, 1>, scalar_prefetch = 0 : i64, scratch_operands = 0 : i64, tpu.core_type = #tpu.core_type<tc>, window_params = [{transform_indices = @transform_0, window_bounds = array<i64: 8, 128>}, {transform_indices = @transform_1, window_bounds = array<i64: 128, 128>}, {transform_indices = @transform_2, window_bounds = array<i64: 1, 128>}, {transform_indices = @transform_3, window_bounds = array<i64: 8, 128>}]} {
    %c0 = arith.constant 0 : index
    %c0_0 = arith.constant 0 : index
    %0 = vector.load %arg2[%c0, %c0_0] : memref<8x128xf32, #tpu.memory_space<vmem>>, vector<8x128xf32>
    %c0_1 = arith.constant 0 : index
    %c0_2 = arith.constant 0 : index
    %1 = vector.load %arg3[%c0_1, %c0_2] : memref<128x128xf32, #tpu.memory_space<vmem>>, vector<128x128xf32>
    %cst = arith.constant dense<0.000000e+00> : vector<8x128xf32>
    %2 = tpu.matmul %0, %1, %cst {dimension_numbers = #tpu.dot_dimension_numbers<[1], [0], [0], [1], [0, 0, 1, 1], [], []>} : vector<8x128xf32>, vector<128x128xf32>, vector<8x128xf32> -> vector<8x128xf32>
    %c0_3 = arith.constant 0 : index
    %c0_4 = arith.constant 0 : index
    %3 = vector.load %arg4[%c0_3, %c0_4] : memref<1x128xf32, #tpu.memory_space<vmem>>, vector<1x128xf32>
    %4 = vector.broadcast %3 : vector<1x128xf32> to vector<8x128xf32>
    %5 = arith.addf %2, %4 : vector<8x128xf32>
    %cst_5 = arith.constant 0.000000e+00 : f32
    %6 = vector.broadcast %cst_5 : f32 to vector<8x128xf32>
    %7 = arith.maximumf %5, %6 : vector<8x128xf32>
    %c0_6 = arith.constant 0 : index
    %c0_7 = arith.constant 0 : index
    %8 = vector.load %arg5[%c0_6, %c0_7] : memref<8x128xf32, #tpu.memory_space<vmem>>, vector<8x128xf32>
    tpu.vector_store %arg5[%c0_6, %c0_7], %7 {strides = array<i32>} : memref<8x128xf32, #tpu.memory_space<vmem>>, vector<8x128xf32>,
    return
  }
  func.func @transform_0(%arg0: i32, %arg1: i32) -> (i32, i32) {
    %c0_i32 = arith.constant 0 : i32
    %c0_i32_0 = arith.constant 0 : i32
    return %arg0, %c0_i32 : i32, i32
  }
  func.func @transform_1(%arg0: i32, %arg1: i32) -> (i32, i32) {
    %c0_i32 = arith.constant 0 : i32
    %c0_i32_0 = arith.constant 0 : i32
    return %c0_i32, %arg1 : i32, i32
  }
  func.func @transform_2(%arg0: i32, %arg1: i32) -> (i32, i32) {
    %c0_i32 = arith.constant 0 : i32
    %c0_i32_0 = arith.constant 0 : i32
    return %c0_i32, %arg1 : i32, i32
  }
  func.func @transform_3(%arg0: i32, %arg1: i32) -> (i32, i32) {
    %c0_i32 = arith.constant 0 : i32
    return %arg0, %arg1 : i32, i32
  }
}

</mosaic_0001>

<bundles_post_ra>
// kernel: tpu_custom_call.1
= control target key start
LH: loop header
LB: loop body
LE: loop exit
PB: predicated region body
PF: predicated region fallthrough
CT: control target
= control target key end

     0   :  { %8 = vsyncpa [#allocation3], 0  ;;  %s227_s0 = inlined_call_operand.hbm [shape: f32[8,128], index: 0, kind: input, shape index: {}]   ;;  %s228_s1 = inlined_call_operand.hbm [shape: f32[128,128], index: 1, kind: input, shape index: {}]   ;;  %s229_s2 = inlined_call_operand.vmem [shape: f32[1,128], index: 2, kind: input, shape index: {}]   ;;  %s230_s3 = inlined_call_operand.hbm [shape: f32[8,128], index: 3, kind: output, shape index: {}]  }
   0x1   :  { %9 = vsyncpa [#allocation6], 0 }
   0x2   :  { %10 = vsyncpa [#allocation4], 0  ;;  %s16_s14 = sshll.u32 %s227_s0, 4  ;;  %s190_s15 = smov [#allocation2]   ;;  %s17_s14 = int_to_ptr.hbm [resolvable:$true] %s16_s14 }
   0x3   :  { %s18_s16 = sshll.u32 %s190_s15, 4  ;;  %s26_s19 = sshll.u32 %s228_s1, 4  ;;  %s19_s16 = int_to_ptr.vmem [resolvable:$true] %s18_s16  ;;  %s27_s19 = int_to_ptr.hbm [resolvable:$true] %s26_s19 }
   0x4   :  { %21 = dma.hbm_to_vmem [thread:$0]  %s17_s14, 128, %s19_s16, [#allocation3]  }
   0x5   :  { %s191_s20 = smov [#allocation5]   ;;  %s192_s22 = smov 128  }
   0x6   :  { %s28_s21 = sshll.u32 %s191_s20, 4  ;;  %s193_s23 = smov 8   ;;  %s29_s21 = int_to_ptr.vmem [resolvable:$true] %s28_s21 }
   0x7   :  { %34 = dma.hbm_to_vmem [thread:$0]  %s27_s19, 2048, %s29_s21, [#allocation6], %s192_s22, %s192_s22, %s193_s23  }
   0x8   :  { %184 = dma.done.wait [#allocation3], 128  }
   0x9   :  { %185 = vsyncadd [#allocation3], 4294967168 }
   0xa   :  { %186 = dma.done.wait [#allocation6], 2048  }
   0xb   :  { %187 = vsyncadd [#allocation6], 4294965248  ;;  %v61_v0 = vld [vmem:[#allocation5 + $0x78] sm:$0xff]  ;;  %v60_v1 = vld [vmem:[#allocation5 + $0x70] sm:$0xff]  ;;  %s194_s24 = smov [#allocation7]   ;;  %s95_s28 = sshll.u32 %s230_s3, 4  ;;  %s96_s28 = int_to_ptr.hbm [resolvable:$true] %s95_s28 }
   0xc   :  { %66 = vmatpush.msra.mxu0 %v61_v0  ;;  %v59_v2 = vld [vmem:[#allocation5 + $0x68] sm:$0xff]  ;;  %v58_v3 = vld [vmem:[#allocation5 + $0x60] sm:$0xff]  ;;  %v57_v4 = vld [vmem:[#allocation5 + $0x58] sm:$0xff]  ;;  %s93_s25 = sshll.u32 %s194_s24, 4  ;;  %s94_s25 = int_to_ptr.vmem [resolvable:$true] %s93_s25 }
   0xd   :  { %v56_v5 = vld [vmem:[#allocation5 + $0x50] sm:$0xff]  ;;  %v55_v6 = vld [vmem:[#allocation5 + $0x48] sm:$0xff]  ;;  %v54_v7 = vld [vmem:[#allocation5 + $0x40] sm:$0xff] }
   0xe   :  { %67 = vmatpush.msra.mxu0 %v60_v1  ;;  %v53_v8 = vld [vmem:[#allocation5 + $0x38] sm:$0xff]  ;;  %v52_v9 = vld [vmem:[#allocation5 + $0x30] sm:$0xff]  ;;  %v51_v10 = vld [vmem:[#allocation5 + $0x28] sm:$0xff] }
   0xf   :  { %v50_v11 = vld [vmem:[#allocation5 + $0x20] sm:$0xff]  ;;  %v49_v12 = vld [vmem:[#allocation5 + $0x18] sm:$0xff]  ;;  %v48_v13 = vld [vmem:[#allocation5 + $0x10] sm:$0xff] }
  0x10   :  { %68 = vmatpush.msra.mxu0 %v59_v2  ;;  %v47_v14 = vld [vmem:[#allocation5 + $0x8] sm:$0xff]  ;;  %v46_v15 = vld [vmem:[#allocation5] sm:$0xff]  ;;  %v45_v16 = vld [vmem:[#allocation2] sm:$0xff] }
  0x11   :  { %v111_v17 = vld [vmem:[%s229_s2] ss:$0 sm:$0xff] }
  0x12   :  { %69 = vmatpush.msra.mxu0 %v58_v3 }
  0x14   :  { %70 = vmatpush.msra.mxu0 %v57_v4 }
  0x16   :  { %71 = vmatpush.msra.mxu0 %v56_v5 }
  0x18   :  { %72 = vmatpush.msra.mxu0 %v55_v6 }
  0x1a   :  { %73 = vmatpush.msra.mxu0 %v54_v7 }
  0x1c   :  { %74 = vmatpush.msra.mxu0 %v53_v8 }
  0x1e   :  { %75 = vmatpush.msra.mxu0 %v52_v9 }
  0x20   :  { %76 = vmatpush.msra.mxu0 %v51_v10 }
  0x22   :  { %77 = vmatpush.msra.mxu0 %v50_v11 }
  0x24   :  { %78 = vmatpush.msra.mxu0 %v49_v12 }
  0x26   :  { %79 = vmatpush.msra.mxu0 %v48_v13 }
  0x28   :  { %80 = vmatpush.msra.mxu0 %v47_v14 }
  0x2a   :  { %81 = vmatpush.msra.mxu0 %v46_v15 }
  0x2b   :  { %82 = vmatmul.f32.vlgmr.msra.gmra.mxu0 %v45_v16 }
  0xa8   :  { %v83_v18 = vpop.f32.mrf.mxu0 }
  0xa9   :  { %v84_v19 = vadd.f32 %v111_v17, %v83_v18 }
  0xab   :  { %v86_v20 = vmax.f32 %v84_v19, 0.0 }
  0xad   :  { %87 = vst [vmem:[#allocation7] sm:$0xff] %v86_v20 }
  0xae   :  { %98 = dma.vmem_to_hbm [thread:$0]  %s94_s25, 128, %s96_s28, [#allocation4]  }
  0xaf   :  { %188 = dma.done.wait [#allocation4], 128  }
  0xb0   :  { %189 = vsyncadd [#allocation4], 4294967168 }
  0xb1   :  { %103 = vsyncpa [#allocation3], 1 }
  0xb2   :  { %104 = vsyncpa [#allocation6], 1 }
  0xb3   :  { %105 = vsyncpa [#allocation4], 1 }

</bundles_post_ra>
